<compile_context>
chip_gen: v5e
topology: v5e:2x2
jax: 0.10.0
libtpu: 0.0.40
codegen_flags: <defaults>
</compile_context>

<pallas_src>
import jax
import jax.numpy as jnp
from jax.experimental import pallas as pl
from jax.experimental.pallas import tpu as pltpu

HEADS = 4          # GATConv heads
HID = 16           # GCN out dim == GAT per-head out dim
OUT_CLASSES = 3    # final Linear out dim
OUT_PAD = 128      # lane-dense padded output width
NEG_SLOPE = 0.2    # GAT LeakyReLU slope (PyG default)


def _xw_kernel(x_ref, dinv_ref, w1_ref, xw_ref):
    """Stage 0: (x @ W1) * D^-1/2 per node (source-side GCN normalization), computed once."""
    xw = jnp.dot(x_ref[...], w1_ref[...], preferred_element_type=jnp.float32)   # [TM, 16]
    xw_ref[...] = xw * dinv_ref[...]


def _gcn_feat_kernel(a_ref, xw_ref, dinv_row_ref, b1_ref, w2_ref, g_ref):
    """Stage 1: GCN aggregation -> +b1, ReLU -> (dropout=eval id) -> h @ W2, per row tile."""
    agg = jnp.dot(a_ref[...], xw_ref[...], preferred_element_type=jnp.float32)  # [TM, 16]
    h = jnp.maximum(dinv_row_ref[...] * agg + b1_ref[...], 0.0)                 # target-side norm
    # F.dropout(x, training=self.training): identity at inference.
    # TODO(synk): training-mode dropout (random mask) not implemented.
    g_ref[...] = jnp.dot(h, w2_ref[...], preferred_element_type=jnp.float32)    # [TM, 64]


def _gat_out_kernel(a_ref, gfull_ref, wsrc_ref, wdst_ref, w3_ref, bias_ref, out_ref):
    """Stage 2: GAT attention (4 heads) + fused (concat,Linear,bias) + log_softmax, per row tile."""
    a = a_ref[...]                       # [TM, N]  0/1 adjacency rows (self-loops included)
    g_full = gfull_ref[...]              # [N, 64]  per-head features of all source nodes
    w3p = w3_ref[...]                    # [64, OUT_PAD] lane-padded final projection

    tm = a.shape[0]
    # Target-row slice of g comes straight out of the resident VMEM block (aligned start).
    row0 = pl.multiple_of(pl.program_id(0) * tm, tm)
    g_tile = gfull_ref[pl.ds(row0, tm), :]                                       # [TM, 64]

    # All-head attention scores on the MXU (block-structured projections).
    s_src = jnp.dot(g_full, wsrc_ref[...], preferred_element_type=jnp.float32)   # [N, 4]
    s_dst = jnp.dot(g_tile, wdst_ref[...], preferred_element_type=jnp.float32)   # [TM, 4]
    s_src_t = jnp.transpose(s_src)                                               # [4, N]

    # Additive mask: present edge -> +0, absent -> -1e30.  Every row has a self-loop,
    # so the row max is finite and exp(e - e_max) underflows to exactly 0 on masked entries.
    mask_add = (a - 1.0) * jnp.float32(1e30)                                     # [TM, N]

    acc = jnp.zeros((tm, w3p.shape[1]), jnp.float32)
    for hd in range(HEADS):
        gh = g_full[:, hd * HID:(hd + 1) * HID]                                  # [N, 16]
        e = s_dst[:, hd:hd + 1] + s_src_t[hd:hd + 1, :]                          # [TM, N]
        e = jnp.where(e > 0, e, NEG_SLOPE * e)                                   # LeakyReLU
        e = e + mask_add
        e_max = jnp.max(e, axis=-1, keepdims=True)
        p = jnp.exp(e - e_max)                                                   # masked -> exactly 0
        alpha = p * pl.reciprocal(jnp.sum(p, axis=-1, keepdims=True), approx=True)
        head_out = jnp.dot(alpha, gh, preferred_element_type=jnp.float32)        # [TM, 16]
        acc = acc + jnp.dot(head_out, w3p[hd * HID:(hd + 1) * HID, :],
                            preferred_element_type=jnp.float32)                  # [TM, OUT_PAD]

    logits = acc + bias_ref[...]                              # fused (b2 @ w3 + b3), lane-padded
    # log_softmax over the first OUT_CLASSES lanes only (rest are zero padding).
    lane = jax.lax.broadcasted_iota(jnp.int32, logits.shape, 1)
    masked = jnp.where(lane < OUT_CLASSES, logits, jnp.float32(-1e30))
    m = jnp.max(masked, axis=-1, keepdims=True)
    ez = jnp.exp(masked - m)                                  # padded lanes -> exactly 0
    lse = jnp.log(jnp.sum(ez, axis=-1, keepdims=True))
    out_ref[...] = logits - m - lse       # padded lanes hold garbage; sliced off in wrapper


def gcngat_forward(x, edge_index, params, tile_rows=None):
    """x: [N, Fin] f32, edge_index: [2, E] int (row 0 = source, row 1 = target)."""
    n, fin = x.shape
    src = edge_index[0]
    dst = edge_index[1]
    # Dense adjacency: A[i, j] = 1 iff edge j -> i (messages j -> i); add self loops.
    a = jnp.zeros((n, n), jnp.float32).at[dst, src].set(1.0)
    diag = jnp.arange(n)
    a = a.at[diag, diag].set(1.0)

    # Single degree vector of A+I (PyG gcn_norm), shared by both normalization sides.
    deg = jnp.sum(a, axis=1, keepdims=True)                       # [N, 1]
    dinv = jnp.where(deg > 0, jax.lax.rsqrt(deg), 0.0)            # [N, 1]

    # Block-structured attention projections so s_all = g @ W (one MXU matmul per side).
    eye = jnp.eye(HEADS, dtype=jnp.float32)
    wsrc = (params["att_src"][:, :, None] * eye[:, None, :]).reshape(HEADS * HID, HEADS)
    wdst = (params["att_dst"][:, :, None] * eye[:, None, :]).reshape(HEADS * HID, HEADS)

    # Fold GAT bias + final Linear bias; pad the projection to a lane-dense width.
    w3 = params["w3"]                                             # [64, 3]
    fused_b = params["b2"] @ w3 + params["b3"]                    # [1, 3]
    w3_pad = jnp.zeros((HEADS * HID, OUT_PAD), jnp.float32).at[:, :OUT_CLASSES].set(w3)
    b_pad = jnp.zeros((1, OUT_PAD), jnp.float32).at[:, :OUT_CLASSES].set(fused_b)

    if tile_rows is None:
        tile_rows = n if n <= 256 else 256
    tm = tile_rows
    assert n % tm == 0 and (tm % 8 == 0 or tm == n), "row tile must divide N and respect (8,128)"
    grid = (n // tm,)

    full2 = lambda shape: pl.BlockSpec(shape, lambda i: (0, 0))   # whole-array block
    rows = lambda shape: pl.BlockSpec(shape, lambda i: (i, 0))    # row-tiled block
    parallel = pltpu.CompilerParams(dimension_semantics=("parallel",))

    # ---- stage 0: (x @ W1) * D^-1/2, computed once per node ----
    xw = pl.pallas_call(
        _xw_kernel,
        out_shape=jax.ShapeDtypeStruct((n, HID), jnp.float32),
        grid=grid,
        in_specs=[rows((tm, fin)), rows((tm, 1)), full2((fin, HID))],
        out_specs=rows((tm, HID)),
        compiler_params=parallel,
    )(x, dinv, params["w1"])

    # ---- stage 1: GCN aggregation -> ReLU -> (dropout) -> GAT linear, row-tiled over targets ----
    g = pl.pallas_call(
        _gcn_feat_kernel,
        out_shape=jax.ShapeDtypeStruct((n, HEADS * HID), jnp.float32),
        grid=grid,
        in_specs=[rows((tm, n)), full2((n, HID)), rows((tm, 1)),
                  full2((1, HID)), full2((HID, HEADS * HID))],
        out_specs=rows((tm, HEADS * HID)),
        compiler_params=parallel,
    )(a, xw, dinv, params["b1"], params["w2"])

    # ---- stage 2: GAT attention + fused Linear + log_softmax, row-tiled over targets ----
    out_pad = pl.pallas_call(
        _gat_out_kernel,
        out_shape=jax.ShapeDtypeStruct((n, OUT_PAD), jnp.float32),
        grid=grid,
        in_specs=[rows((tm, n)), full2((n, HEADS * HID)),
                  full2((HEADS * HID, HEADS)), full2((HEADS * HID, HEADS)),
                  full2((HEADS * HID, OUT_PAD)), full2((1, OUT_PAD))],
        out_specs=rows((tm, OUT_PAD)),
        compiler_params=parallel,
    )(a, g, wsrc, wdst, w3_pad, b_pad)

    return out_pad[:, :OUT_CLASSES]


def init_params(key, fin):
    ks = jax.random.split(key, 8)

    def glorot(k, shape):
        fan_in, fan_out = shape[0], shape[-1]
        lim = (6.0 / (fan_in + fan_out)) ** 0.5
        return jax.random.uniform(k, shape, jnp.float32, -lim, lim)

    return {
        # GCNConv(fin, 16): weight used as x @ W1, bias added post-aggregation.
        "w1": glorot(ks[0], (fin, HID)),
        "b1": jnp.zeros((1, HID), jnp.float32),
        # GATConv(16, 16, heads=4): linear weight (for x @ W), attention vectors, bias.
        "w2": glorot(ks[1], (HID, HEADS * HID)),
        "att_src": glorot(ks[2], (HEADS, HID)),
        "att_dst": glorot(ks[3], (HEADS, HID)),
        "b2": jnp.zeros((1, HEADS * HID), jnp.float32),
        # Linear(64, 3)
        "w3": glorot(ks[4], (HEADS * HID, OUT_CLASSES)),
        "b3": jnp.zeros((1, OUT_CLASSES), jnp.float32),
    }


if __name__ == "__main__":
    N, FIN = 32, 8  # small synthetic graph: 32 nodes, 8 input features

    key = jax.random.PRNGKey(0)
    k_x, k_adj, k_p = jax.random.split(key, 3)

    x = jax.random.normal(k_x, (N, FIN), jnp.float32)

    # Deterministic random symmetric graph (like obsp['connectivities'].nonzero()).
    r = jax.random.uniform(k_adj, (N, N))
    adj = (r < 0.15)
    adj = adj | adj.T
    adj = adj & (~jnp.eye(N, dtype=bool))
    src, dst = jnp.nonzero(adj)
    edge_index = jnp.stack([src, dst]).astype(jnp.int32)

    params = init_params(k_p, FIN)

    out = gcngat_forward(x, edge_index, params, tile_rows=16)  # 2 row tiles: exercises the grid
    out = jax.block_until_ready(out)

    assert out.shape == (N, OUT_CLASSES)
    assert bool(jnp.all(jnp.isfinite(out)))
    # rows of log_softmax should exp-sum to 1
    assert bool(jnp.allclose(jnp.sum(jnp.exp(out), axis=1), 1.0, atol=1e-4))
    print("KERNEL_OK")
</pallas_src>

<mosaic_0001>
module attributes {stable_mosaic.version = 11 : i64} {
  func.func @_xw_kernel(%arg0: i32, %arg1: memref<16x8xf32, #tpu.memory_space<vmem>>, %arg2: memref<16x1xf32, #tpu.memory_space<vmem>>, %arg3: memref<8x16xf32, #tpu.memory_space<vmem>>, %arg4: memref<16x16xf32, #tpu.memory_space<vmem>>) attributes {dimension_semantics = [#tpu.dimension_semantics<parallel>], iteration_bounds = array<i64: 2>, scalar_prefetch = 0 : i64, scratch_operands = 0 : i64, tpu.core_type = #tpu.core_type<tc>, window_params = [{transform_indices = @transform_0, window_bounds = array<i64: 16, 8>}, {transform_indices = @transform_1, window_bounds = array<i64: 16, 1>}, {pipeline_mode = #tpu.pipeline_mode<synchronous>, transform_indices = @transform_2, window_bounds = array<i64: 8, 16>}, {transform_indices = @transform_3, window_bounds = array<i64: 16, 16>}]} {
    %c0 = arith.constant 0 : index
    %c0_0 = arith.constant 0 : index
    %0 = vector.load %arg1[%c0, %c0_0] : memref<16x8xf32, #tpu.memory_space<vmem>>, vector<16x8xf32>
    %c0_1 = arith.constant 0 : index
    %c0_2 = arith.constant 0 : index
    %1 = vector.load %arg3[%c0_1, %c0_2] : memref<8x16xf32, #tpu.memory_space<vmem>>, vector<8x16xf32>
    %cst = arith.constant dense<0.000000e+00> : vector<16x16xf32>
    %2 = tpu.matmul %0, %1, %cst {dimension_numbers = #tpu.dot_dimension_numbers<[1], [0], [0], [1], [0, 0, 1, 1], [], []>} : vector<16x8xf32>, vector<8x16xf32>, vector<16x16xf32> -> vector<16x16xf32>
    %c0_3 = arith.constant 0 : index
    %c0_4 = arith.constant 0 : index
    %3 = vector.load %arg2[%c0_3, %c0_4] : memref<16x1xf32, #tpu.memory_space<vmem>>, vector<16x1xf32>
    %4 = vector.broadcast %3 : vector<16x1xf32> to vector<16x16xf32>
    %5 = arith.mulf %2, %4 : vector<16x16xf32>
    %c0_5 = arith.constant 0 : index
    %c0_6 = arith.constant 0 : index
    %6 = vector.load %arg4[%c0_5, %c0_6] : memref<16x16xf32, #tpu.memory_space<vmem>>, vector<16x16xf32>
    tpu.vector_store %arg4[%c0_5, %c0_6], %5 {strides = array<i32>} : memref<16x16xf32, #tpu.memory_space<vmem>>, vector<16x16xf32>,
    return
  }
  func.func @transform_0(%arg0: i32) -> (i32, i32) {
    %c0_i32 = arith.constant 0 : i32
    %c0_i32_0 = arith.constant 0 : i32
    return %arg0, %c0_i32 : i32, i32
  }
  func.func @transform_1(%arg0: i32) -> (i32, i32) {
    %c0_i32 = arith.constant 0 : i32
    %c0_i32_0 = arith.constant 0 : i32
    return %arg0, %c0_i32 : i32, i32
  }
  func.func @transform_2(%arg0: i32) -> (i32, i32) {
    %c0_i32 = arith.constant 0 : i32
    %c0_i32_0 = arith.constant 0 : i32
    %c0_i32_1 = arith.constant 0 : i32
    return %c0_i32, %c0_i32_0 : i32, i32
  }
  func.func @transform_3(%arg0: i32) -> (i32, i32) {
    %c0_i32 = arith.constant 0 : i32
    %c0_i32_0 = arith.constant 0 : i32
    return %arg0, %c0_i32 : i32, i32
  }
}

</mosaic_0001>

<bundles_post_ra>
// kernel: tpu_custom_call.1
= control target key start
LH: loop header
LB: loop body
LE: loop exit
PB: predicated region body
PF: predicated region fallthrough
CT: control target
= control target key end

     0   :  { %s369_s12 = smov 0   ;;  %s392_s0 = inlined_call_operand.vmem [shape: f32[32,8], index: 0, kind: input, shape index: {}]   ;;  %s393_s1 = inlined_call_operand.vmem [shape: f32[32,1], index: 1, kind: input, shape index: {}]   ;;  %s394_s2 = inlined_call_operand.vmem [shape: f32[8,16], index: 2, kind: input, shape index: {}]   ;;  %s395_s3 = inlined_call_operand.vmem [shape: f32[32,16], index: 3, kind: output, shape index: {}]  }
   0x1 LB: > { %s314_s13 = sadd.s32 4294967295, %s346_s12   ;;  %p318_p0 = scmp.ge.s32.totalorder %s346_s12, 1  ;;  %s346_s12 = sphi %s369_s12, %s13_s12  }
   0x2   : > { %p149_p1 = scmp.lt.s32.totalorder %s346_s12, 3 }
   0x4   : > { %p150_p2 = pnand %p318_p0, %p149_p1 }
   0x5   : > { %s319_s16 = sshll.u32 (!%p150_p2), %s314_s13, 1 }
   0x6   : > { %153 = sbr.rel (%p150_p2) target bundleno = 145 (0x91), region = 32  ;;  %p179_p3 = scmp.lt.s32.totalorder (!%p150_p2), %s319_s16, 3 }
   0xb   : > { %v198_v0 = vld [vmem:[%s394_s2] sm:$0xff]  ;;  %v348_v1 = vmov 0   ;;  %s397_s16 = smov (!%p179_p3, %s319_s16), 3  ;;  %vm199_vm0 = vcmask 64512   ;;  %vm243_vm1 = vcmask 130048  }
   0xc   : > { %339 = vset.pattern.permute.xlu0 %v348_v1  ;;  %221 = vmatpush.msra.mxu0 %v198_v0  ;;  %s320_s17 = sshll.u32 %s397_s16, 3 }
   0xd   : > { %329 = vmatpush.msra.mxu1 %v198_v0  ;;  %s188_s20 = scalar_lea.vmem %s393_s1, %s320_s17  ;;  %s182_s23 = scalar_lea.vmem %s392_s0, %s320_s17 }
   0xe   : > { %v229_v2 = vld [vmem:[%s188_s20] sm:$0xff]  ;;  %v197_v4 = vld [vmem:[%s182_s23 + $0x8] sm:$0xff]  ;;  %s194_s26 = scalar_lea.vmem %s395_s3, %s320_s17 }
   0xf   : > { %233 = vperm.xlu0 %339, %v229_v2   ;;  %v196_v3 = vld [vmem:[%s182_s23] sm:$0xff]  ;;  %326 = vmatmul.msk.f32.vlgmr.msra.gmra.mxu1 %vm199_vm0, %v197_v4  ;;  %v230_v5 = vld [vmem:[%s188_s20 + $0x8] sm:$0xff] }
  0x10   : > { %325 = vmatmul.msk.f32.vlgmr.msra.gmra.mxu0 %vm199_vm0, %v196_v3 }
  0x17   : > { %238 = vperm.xlu0 %339, %v230_v5  }
  0x81   : > { %v234_v6 = vpop.permute.xlu0 %233 }
  0x89   : > { %v239_v7 = vpop.permute.xlu0 %238 }
  0x8c   : > { %v226_v9 = vpop.f32.mrf.mxu1 }
  0x8d   : > { %v223_v8 = vpop.f32.mrf.mxu0  ;;  %v242_v11 = vmul.f32 %v239_v7, %v226_v9 }
  0x8e   : > { %v241_v10 = vmul.f32 %v234_v6, %v223_v8 }
  0x8f   : > { %245 = vst.msk [vmem:[%s194_s26 + $0x8] sm:$0xff] %vm243_vm1, %v242_v11 }
  0x90   : > { %244 = vst.msk [vmem:[%s194_s26] sm:$0xff] %vm243_vm1, %v241_v10 }
  0x91 PF: > { %s13_s12 = sadd.s32 1, %s346_s12  }
  0x92   : > { %p10_p4 = scmp.ge.s32.totalorder %s13_s12, 4  }
  0x94   :  { %12 = sbr.rel (!%p10_p4) target bundleno = 1 (0x1), region = 65 }

</bundles_post_ra>
